<compile_context>
chip_gen: v7x
topology: tpu7x:2x2x1
jax: 0.10.0
libtpu: 0.0.40
codegen_flags: <defaults>
</compile_context>

<pallas_src>
import numpy as np
import jax
import jax.numpy as jnp
from jax.experimental import pallas as pl
from jax.experimental.pallas import tpu as pltpu

ENCODING_DIM = 10
LAMBDA = 1.0


def harmon_kernel(e1_ref, e2_ref, r_ref, vt_ref, wsym_ref, b_ref, c_ref, out_ref):
    """score(H(muy(x), x)) for x = r * ccorr(e1, e2), transposed (D, TN) layout."""
    d = e1_ref.shape[0]

    e2 = e2_ref[...]                               # (D, TN)
    # Doubled copy so every circular shift of e2 is a static sublane slice.
    e2d = jnp.concatenate([e2, e2], axis=0)        # (2D, TN)

    # Circular correlation (irfft(conj(rfft(e1)) * rfft(e2)) in the torch code):
    #   ccorr[k, n] = sum_j e1[j, n] * e2[(j + k) % D, n]
    # computed as D broadcasted VPU multiply-adds: no per-k MXU matmuls, no
    # cross-lane XLU reductions, no compare/select accumulation.
    ccorr = e1_ref[0:1, :] * e2                    # j = 0 term
    for j in range(1, d):                          # D = 10, fully unrolled
        ccorr = ccorr + e1_ref[j:j + 1, :] * e2d[j:j + d, :]

    # harmonic holographic embedding (transposed): x[k, n]
    x = r_ref[...] * ccorr

    # muy(x): h = lambda * (V^T @ x) + c, with c = -0.5 * (b @ V) folded in glue.
    # Output of the dot is (D, TN): lane axis fully dense.
    h = LAMBDA * jnp.dot(vt_ref[...], x, preferred_element_type=jnp.float32) + c_ref[...]

    # H(h, x) with all three row-wise reductions fused into ONE sublane reduce.
    hw = jnp.dot(wsym_ref[...], h, preferred_element_type=jnp.float32)
    diff = h - x
    t = h * (hw + b_ref[...]) - LAMBDA * (diff * diff)
    out_ref[...] = jnp.sum(t, axis=0, keepdims=True)   # (1, TN) lane-dense store


def make_params(no_entities, no_relationships, d=ENCODING_DIM):
    # Deterministic synthetic init (shapes match the torch module's __init__).
    key = jax.random.PRNGKey(42)
    k1, k2, k3, k4 = jax.random.split(key, 4)
    ent_emb = jax.random.normal(k1, (no_entities, d), jnp.float32)   # nn.Embedding ~ N(0,1)
    rel_emb = jax.random.normal(k2, (no_relationships, d), jnp.float32)
    W = jax.random.uniform(k3, (d, d), jnp.float32)                  # torch.rand
    b = jax.random.uniform(k4, (d,), jnp.float32)                    # torch.rand
    # TODO(synk): the torch module also constructs an nn.RNN and a LogSoftmax loss
    # that are never used in forward(), so they are intentionally not materialized.
    return ent_emb, rel_emb, W, b


def harmon_net_forward(samples, ent_emb, rel_emb, W, b, lambda_=LAMBDA, tn_max=1024):
    B, S, _ = samples.shape
    D = ent_emb.shape[1]
    N = B * S

    # Glue: embedding gathers, flatten to [N, D].
    e1 = jnp.take(ent_emb, samples[:, :, 0], axis=0).reshape(N, D)
    r = jnp.take(rel_emb, samples[:, :, 1], axis=0).reshape(N, D)
    e2 = jnp.take(ent_emb, samples[:, :, 2], axis=0).reshape(N, D)

    # Transposed, lane-dense layout: (D, N_pad) with N on the 128-lane axis.
    TN = min(tn_max, ((N + 127) // 128) * 128)
    N_pad = ((N + TN - 1) // TN) * TN
    pad = N_pad - N

    def to_lanes(a):
        return jnp.pad(a.T, ((0, 0), (0, pad)))     # (D, N_pad)

    e1T, e2T, rT = to_lanes(e1), to_lanes(e2), to_lanes(r)

    # Glue: tiny 10x10 symmetric matrix, its shifted inverse, folded bias terms.
    Wsym = W + W.T
    V = jnp.linalg.inv(Wsym - lambda_ * jnp.eye(D, dtype=jnp.float32))
    Vt = V.T                                         # h = lambda * Vt @ x + c
    c_col = (-0.5 * (b @ V)).reshape(D, 1)           # constant folded out of kernel
    b_col = b.reshape(D, 1)

    grid = (N_pad // TN,)
    out = pl.pallas_call(
        harmon_kernel,
        out_shape=jax.ShapeDtypeStruct((1, N_pad), jnp.float32),
        grid=grid,
        in_specs=[
            pl.BlockSpec((D, TN), lambda i: (0, i)),     # e1 tile (pipelined)
            pl.BlockSpec((D, TN), lambda i: (0, i)),     # e2 tile
            pl.BlockSpec((D, TN), lambda i: (0, i)),     # r  tile
            pl.BlockSpec((D, D), lambda i: (0, 0)),      # V^T   (resident)
            pl.BlockSpec((D, D), lambda i: (0, 0)),      # Wsym  (resident)
            pl.BlockSpec((D, 1), lambda i: (0, 0)),      # b     (resident)
            pl.BlockSpec((D, 1), lambda i: (0, 0)),      # c = -0.5 b V (resident)
        ],
        out_specs=pl.BlockSpec((1, TN), lambda i: (0, i)),
        compiler_params=pltpu.CompilerParams(
            dimension_semantics=("parallel",)),          # megacore sharding (v7x)
    )(e1T, e2T, rT, Vt, Wsym, b_col, c_col)

    return out[0, :N].reshape(B, S)


def harmon_net_reference(samples, ent_emb, rel_emb, W, b, lambda_=LAMBDA):
    # Pure-JAX reference mirroring the torch forward (FFT-based circular correlation).
    e1 = jnp.take(ent_emb, samples[:, :, 0], axis=0)
    r = jnp.take(rel_emb, samples[:, :, 1], axis=0)
    e2 = jnp.take(ent_emb, samples[:, :, 2], axis=0)
    ccorr = jnp.real(
        jnp.fft.ifft(jnp.conj(jnp.fft.fft(e1, axis=-1)) * jnp.fft.fft(e2, axis=-1), axis=-1)
    )
    x = r * ccorr
    D = ent_emb.shape[1]
    Wsym = W + W.T
    V = jnp.linalg.inv(Wsym - lambda_ * jnp.eye(D, dtype=jnp.float32))
    h = jnp.einsum("bsk,kt->bst", -0.5 * b + lambda_ * x, V)
    hW = jnp.einsum("bsj,jk->bsk", h, Wsym)
    res = (
        jnp.sum(hW * h, axis=-1)
        + jnp.einsum("bsk,k->bs", h, b)
        - lambda_ * jnp.sum((h - x) ** 2, axis=-1)
    )
    return res


if __name__ == "__main__":
    no_entities, no_relationships = 20, 5
    B, S = 2, 8

    ent_emb, rel_emb, W, b = make_params(no_entities, no_relationships)

    key = jax.random.PRNGKey(0)
    ke, kr = jax.random.split(key)
    ent_idx = jax.random.randint(ke, (B, S, 2), 0, no_entities, dtype=jnp.int32)
    rel_idx = jax.random.randint(kr, (B, S, 1), 0, no_relationships, dtype=jnp.int32)
    samples = jnp.concatenate([ent_idx[:, :, :1], rel_idx, ent_idx[:, :, 1:]], axis=2)

    out = harmon_net_forward(samples, ent_emb, rel_emb, W, b)
    out = jax.block_until_ready(out)

    ref = harmon_net_reference(samples, ent_emb, rel_emb, W, b)
    assert out.shape == (B, S)
    np.testing.assert_allclose(np.asarray(out), np.asarray(ref), rtol=5e-3, atol=5e-3)

    print("KERNEL_OK")
</pallas_src>

<mosaic_0001>
module attributes {stable_mosaic.version = 11 : i64} {
  func.func @harmon_kernel(%arg0: i32, %arg1: memref<10x128xf32, #tpu.memory_space<vmem>>, %arg2: memref<10x128xf32, #tpu.memory_space<vmem>>, %arg3: memref<10x128xf32, #tpu.memory_space<vmem>>, %arg4: memref<10x10xf32, #tpu.memory_space<vmem>>, %arg5: memref<10x10xf32, #tpu.memory_space<vmem>>, %arg6: memref<10x1xf32, #tpu.memory_space<vmem>>, %arg7: memref<10x1xf32, #tpu.memory_space<vmem>>, %arg8: memref<1x128xf32, #tpu.memory_space<vmem>>) attributes {dimension_semantics = [#tpu.dimension_semantics<parallel>], iteration_bounds = array<i64: 1>, scalar_prefetch = 0 : i64, scratch_operands = 0 : i64, tpu.core_type = #tpu.core_type<tc>, window_params = [{transform_indices = @transform_0, window_bounds = array<i64: 10, 128>}, {transform_indices = @transform_1, window_bounds = array<i64: 10, 128>}, {transform_indices = @transform_2, window_bounds = array<i64: 10, 128>}, {pipeline_mode = #tpu.pipeline_mode<synchronous>, transform_indices = @transform_3, window_bounds = array<i64: 10, 10>}, {pipeline_mode = #tpu.pipeline_mode<synchronous>, transform_indices = @transform_4, window_bounds = array<i64: 10, 10>}, {pipeline_mode = #tpu.pipeline_mode<synchronous>, transform_indices = @transform_5, window_bounds = array<i64: 10, 1>}, {pipeline_mode = #tpu.pipeline_mode<synchronous>, transform_indices = @transform_6, window_bounds = array<i64: 10, 1>}, {transform_indices = @transform_7, window_bounds = array<i64: 1, 128>}]} {
    %c0 = arith.constant 0 : index
    %c0_0 = arith.constant 0 : index
    %0 = vector.load %arg2[%c0, %c0_0] : memref<10x128xf32, #tpu.memory_space<vmem>>, vector<10x128xf32>
    %1 = tpu.concatenate %0, %0 in 0 : vector<10x128xf32>, vector<10x128xf32> -> vector<20x128xf32>
    %c0_1 = arith.constant 0 : index
    %c0_2 = arith.constant 0 : index
    %2 = vector.load %arg1[%c0_1, %c0_2] : memref<10x128xf32, #tpu.memory_space<vmem>>, vector<1x128xf32>
    %3 = vector.broadcast %2 : vector<1x128xf32> to vector<10x128xf32>
    %4 = arith.mulf %3, %0 : vector<10x128xf32>
    %c1 = arith.constant 1 : index
    %c0_3 = arith.constant 0 : index
    %5 = vector.load %arg1[%c1, %c0_3] : memref<10x128xf32, #tpu.memory_space<vmem>>, vector<1x128xf32>
    %6 = vector.extract_strided_slice %1 {offsets = [1, 0], sizes = [10, 128], strides = [1, 1]} : vector<20x128xf32> to vector<10x128xf32>
    %7 = vector.broadcast %5 : vector<1x128xf32> to vector<10x128xf32>
    %8 = arith.mulf %7, %6 : vector<10x128xf32>
    %9 = arith.addf %4, %8 : vector<10x128xf32>
    %c2 = arith.constant 2 : index
    %c0_4 = arith.constant 0 : index
    %10 = vector.load %arg1[%c2, %c0_4] : memref<10x128xf32, #tpu.memory_space<vmem>>, vector<1x128xf32>
    %11 = vector.extract_strided_slice %1 {offsets = [2, 0], sizes = [10, 128], strides = [1, 1]} : vector<20x128xf32> to vector<10x128xf32>
    %12 = vector.broadcast %10 : vector<1x128xf32> to vector<10x128xf32>
    %13 = arith.mulf %12, %11 : vector<10x128xf32>
    %14 = arith.addf %9, %13 : vector<10x128xf32>
    %c3 = arith.constant 3 : index
    %c0_5 = arith.constant 0 : index
    %15 = vector.load %arg1[%c3, %c0_5] : memref<10x128xf32, #tpu.memory_space<vmem>>, vector<1x128xf32>
    %16 = vector.extract_strided_slice %1 {offsets = [3, 0], sizes = [10, 128], strides = [1, 1]} : vector<20x128xf32> to vector<10x128xf32>
    %17 = vector.broadcast %15 : vector<1x128xf32> to vector<10x128xf32>
    %18 = arith.mulf %17, %16 : vector<10x128xf32>
    %19 = arith.addf %14, %18 : vector<10x128xf32>
    %c4 = arith.constant 4 : index
    %c0_6 = arith.constant 0 : index
    %20 = vector.load %arg1[%c4, %c0_6] : memref<10x128xf32, #tpu.memory_space<vmem>>, vector<1x128xf32>
    %21 = vector.extract_strided_slice %1 {offsets = [4, 0], sizes = [10, 128], strides = [1, 1]} : vector<20x128xf32> to vector<10x128xf32>
    %22 = vector.broadcast %20 : vector<1x128xf32> to vector<10x128xf32>
    %23 = arith.mulf %22, %21 : vector<10x128xf32>
    %24 = arith.addf %19, %23 : vector<10x128xf32>
    %c5 = arith.constant 5 : index
    %c0_7 = arith.constant 0 : index
    %25 = vector.load %arg1[%c5, %c0_7] : memref<10x128xf32, #tpu.memory_space<vmem>>, vector<1x128xf32>
    %26 = vector.extract_strided_slice %1 {offsets = [5, 0], sizes = [10, 128], strides = [1, 1]} : vector<20x128xf32> to vector<10x128xf32>
    %27 = vector.broadcast %25 : vector<1x128xf32> to vector<10x128xf32>
    %28 = arith.mulf %27, %26 : vector<10x128xf32>
    %29 = arith.addf %24, %28 : vector<10x128xf32>
    %c6 = arith.constant 6 : index
    %c0_8 = arith.constant 0 : index
    %30 = vector.load %arg1[%c6, %c0_8] : memref<10x128xf32, #tpu.memory_space<vmem>>, vector<1x128xf32>
    %31 = vector.extract_strided_slice %1 {offsets = [6, 0], sizes = [10, 128], strides = [1, 1]} : vector<20x128xf32> to vector<10x128xf32>
    %32 = vector.broadcast %30 : vector<1x128xf32> to vector<10x128xf32>
    %33 = arith.mulf %32, %31 : vector<10x128xf32>
    %34 = arith.addf %29, %33 : vector<10x128xf32>
    %c7 = arith.constant 7 : index
    %c0_9 = arith.constant 0 : index
    %35 = vector.load %arg1[%c7, %c0_9] : memref<10x128xf32, #tpu.memory_space<vmem>>, vector<1x128xf32>
    %36 = vector.extract_strided_slice %1 {offsets = [7, 0], sizes = [10, 128], strides = [1, 1]} : vector<20x128xf32> to vector<10x128xf32>
    %37 = vector.broadcast %35 : vector<1x128xf32> to vector<10x128xf32>
    %38 = arith.mulf %37, %36 : vector<10x128xf32>
    %39 = arith.addf %34, %38 : vector<10x128xf32>
    %c8 = arith.constant 8 : index
    %c0_10 = arith.constant 0 : index
    %40 = vector.load %arg1[%c8, %c0_10] : memref<10x128xf32, #tpu.memory_space<vmem>>, vector<1x128xf32>
    %41 = vector.extract_strided_slice %1 {offsets = [8, 0], sizes = [10, 128], strides = [1, 1]} : vector<20x128xf32> to vector<10x128xf32>
    %42 = vector.broadcast %40 : vector<1x128xf32> to vector<10x128xf32>
    %43 = arith.mulf %42, %41 : vector<10x128xf32>
    %44 = arith.addf %39, %43 : vector<10x128xf32>
    %c9 = arith.constant 9 : index
    %c0_11 = arith.constant 0 : index
    %45 = vector.load %arg1[%c9, %c0_11] : memref<10x128xf32, #tpu.memory_space<vmem>>, vector<1x128xf32>
    %46 = vector.extract_strided_slice %1 {offsets = [9, 0], sizes = [10, 128], strides = [1, 1]} : vector<20x128xf32> to vector<10x128xf32>
    %47 = vector.broadcast %45 : vector<1x128xf32> to vector<10x128xf32>
    %48 = arith.mulf %47, %46 : vector<10x128xf32>
    %49 = arith.addf %44, %48 : vector<10x128xf32>
    %c0_12 = arith.constant 0 : index
    %c0_13 = arith.constant 0 : index
    %50 = vector.load %arg3[%c0_12, %c0_13] : memref<10x128xf32, #tpu.memory_space<vmem>>, vector<10x128xf32>
    %51 = arith.mulf %50, %49 : vector<10x128xf32>
    %c0_14 = arith.constant 0 : index
    %c0_15 = arith.constant 0 : index
    %52 = vector.load %arg4[%c0_14, %c0_15] : memref<10x10xf32, #tpu.memory_space<vmem>>, vector<10x10xf32>
    %cst = arith.constant dense<0.000000e+00> : vector<10x128xf32>
    %53 = tpu.matmul %52, %51, %cst {dimension_numbers = #tpu.dot_dimension_numbers<[1], [0], [0], [1], [0, 0, 1, 1], [], []>} : vector<10x10xf32>, vector<10x128xf32>, vector<10x128xf32> -> vector<10x128xf32>
    %cst_16 = arith.constant 1.000000e+00 : f32
    %54 = vector.broadcast %cst_16 : f32 to vector<10x128xf32>
    %55 = arith.mulf %54, %53 : vector<10x128xf32>
    %c0_17 = arith.constant 0 : index
    %c0_18 = arith.constant 0 : index
    %56 = vector.load %arg7[%c0_17, %c0_18] : memref<10x1xf32, #tpu.memory_space<vmem>>, vector<10x1xf32>
    %57 = vector.broadcast %56 : vector<10x1xf32> to vector<10x128xf32>
    %58 = arith.addf %55, %57 : vector<10x128xf32>
    %c0_19 = arith.constant 0 : index
    %c0_20 = arith.constant 0 : index
    %59 = vector.load %arg5[%c0_19, %c0_20] : memref<10x10xf32, #tpu.memory_space<vmem>>, vector<10x10xf32>
    %cst_21 = arith.constant dense<0.000000e+00> : vector<10x128xf32>
    %60 = tpu.matmul %59, %58, %cst_21 {dimension_numbers = #tpu.dot_dimension_numbers<[1], [0], [0], [1], [0, 0, 1, 1], [], []>} : vector<10x10xf32>, vector<10x128xf32>, vector<10x128xf32> -> vector<10x128xf32>
    %61 = arith.subf %58, %51 : vector<10x128xf32>
    %c0_22 = arith.constant 0 : index
    %c0_23 = arith.constant 0 : index
    %62 = vector.load %arg6[%c0_22, %c0_23] : memref<10x1xf32, #tpu.memory_space<vmem>>, vector<10x1xf32>
    %63 = vector.broadcast %62 : vector<10x1xf32> to vector<10x128xf32>
    %64 = arith.addf %60, %63 : vector<10x128xf32>
    %65 = arith.mulf %58, %64 : vector<10x128xf32>
    %66 = arith.mulf %61, %61 : vector<10x128xf32>
    %cst_24 = arith.constant 1.000000e+00 : f32
    %67 = vector.broadcast %cst_24 : f32 to vector<10x128xf32>
    %68 = arith.mulf %67, %66 : vector<10x128xf32>
    %69 = arith.subf %65, %68 : vector<10x128xf32>
    %cst_25 = arith.constant dense<0.000000e+00> : vector<128xf32>
    %70 = vector.multi_reduction <add>, %69, %cst_25 [0] : vector<10x128xf32> to vector<128xf32>
    %71 = vector.shape_cast %70 : vector<128xf32> to vector<1x128xf32>
    %c0_26 = arith.constant 0 : index
    %c0_27 = arith.constant 0 : index
    %72 = vector.load %arg8[%c0_26, %c0_27] : memref<1x128xf32, #tpu.memory_space<vmem>>, vector<1x128xf32>
    tpu.vector_store %arg8[%c0_26, %c0_27], %71 {strides = array<i32>} : memref<1x128xf32, #tpu.memory_space<vmem>>, vector<1x128xf32>,
    return
  }
  func.func @transform_0(%arg0: i32) -> (i32, i32) {
    %c0_i32 = arith.constant 0 : i32
    %c0_i32_0 = arith.constant 0 : i32
    return %c0_i32, %arg0 : i32, i32
  }
  func.func @transform_1(%arg0: i32) -> (i32, i32) {
    %c0_i32 = arith.constant 0 : i32
    %c0_i32_0 = arith.constant 0 : i32
    return %c0_i32, %arg0 : i32, i32
  }
  func.func @transform_2(%arg0: i32) -> (i32, i32) {
    %c0_i32 = arith.constant 0 : i32
    %c0_i32_0 = arith.constant 0 : i32
    return %c0_i32, %arg0 : i32, i32
  }
  func.func @transform_3(%arg0: i32) -> (i32, i32) {
    %c0_i32 = arith.constant 0 : i32
    %c0_i32_0 = arith.constant 0 : i32
    %c0_i32_1 = arith.constant 0 : i32
    return %c0_i32, %c0_i32_0 : i32, i32
  }
  func.func @transform_4(%arg0: i32) -> (i32, i32) {
    %c0_i32 = arith.constant 0 : i32
    %c0_i32_0 = arith.constant 0 : i32
    %c0_i32_1 = arith.constant 0 : i32
    return %c0_i32, %c0_i32_0 : i32, i32
  }
  func.func @transform_5(%arg0: i32) -> (i32, i32) {
    %c0_i32 = arith.constant 0 : i32
    %c0_i32_0 = arith.constant 0 : i32
    %c0_i32_1 = arith.constant 0 : i32
    return %c0_i32, %c0_i32_0 : i32, i32
  }
  func.func @transform_6(%arg0: i32) -> (i32, i32) {
    %c0_i32 = arith.constant 0 : i32
    %c0_i32_0 = arith.constant 0 : i32
    %c0_i32_1 = arith.constant 0 : i32
    return %c0_i32, %c0_i32_0 : i32, i32
  }
  func.func @transform_7(%arg0: i32) -> (i32, i32) {
    %c0_i32 = arith.constant 0 : i32
    %c0_i32_0 = arith.constant 0 : i32
    return %c0_i32, %arg0 : i32, i32
  }
}

</mosaic_0001>

<bundles_post_ra>
// kernel: tpu_custom_call.1
= control target key start
LH: loop header
LB: loop body
LE: loop exit
PB: predicated region body
PF: predicated region fallthrough
CT: control target
= control target key end

     0   :  { %12 = vsyncpa [#allocation3], 0  ;;  %s760_s0 = inlined_call_operand.vmem [shape: f32[10,128], index: 0, kind: input, shape index: {}]   ;;  %s761_s1 = inlined_call_operand.vmem [shape: f32[10,128], index: 1, kind: input, shape index: {}]   ;;  %s762_s2 = inlined_call_operand.hbm [shape: f32[10,128], index: 2, kind: input, shape index: {}]   ;;  %s763_s3 = inlined_call_operand.hbm [shape: f32[10,10], index: 3, kind: input, shape index: {}]   ;;  %s764_s4 = inlined_call_operand.vmem [shape: f32[10,10], index: 4, kind: input, shape index: {}]   ;;  %s765_s5 = inlined_call_operand.vmem [shape: f32[10,1], index: 5, kind: input, shape index: {}]   ;;  %s766_s6 = inlined_call_operand.vmem [shape: f32[10,1], index: 6, kind: input, shape index: {}]   ;;  %s767_s7 = inlined_call_operand.hbm [shape: f32[1,128], index: 7, kind: output, shape index: {}]  }
   0x1   :  { %13 = vsyncpa [#allocation6], 0 }
   0x2   :  { %14 = vsyncpa [#allocation4], 0  ;;  %s585_s24 = smov [#allocation2]   ;;  %s513_s28 = scalar_lea.hbm %s762_s2, 256 }
   0x3   :  { %s24_s25 = sshll.u32 %s585_s24, 4  ;;  %p514_p0 = scmp.ne.s32.totalorder %s762_s2, %s513_s28  ;;  %s25_s25 = int_to_ptr.vmem [resolvable:$true] %s24_s25 }
   0x4   :  { %p517_p1 = scmp.lt.u32.totalorder %s513_s28, %s762_s2 }
   0x6   :  { %p519_p2 = pnand %p517_p1, %p514_p0 }
   0x8   :  { %522 = shalt.err (!%p519_p2)
}
   0x9   :  { %s523_s10 = scalar_lea.vmem %s25_s25, 256  ;;  %p528_p4 = scmp.lt.s32.totalorder %s25_s25, %s25_s25 }
   0xa   :  { %p524_p3 = scmp.ne.s32.totalorder %s25_s25, %s523_s10  ;;  %p529_p5 = scmp.lt.s32.totalorder %s523_s10, %s523_s10 }
   0xc   :  { %p530_p6 = por %p529_p5, %p528_p4 }
   0xe   :  { %p531_p7 = pnand %p530_p6, %p524_p3 }
  0x10   :  { %534 = shalt.err (!%p531_p7)
}
  0x11   :  { %s586_s11 = smov 128   ;;  %s587_s12 = smov 8  }
  0x12   :  { %30 = dma.hbm_to_vmem [thread:$0]  %s762_s2, 256, %s25_s25, [#allocation3], %s586_s11, %s586_s11, %s587_s12  }
  0x13   :  { %s588_s15 = smov [#allocation5]   ;;  %s535_s19 = scalar_lea.hbm %s763_s3, 256 }
  0x14   :  { %s36_s16 = sshll.u32 %s588_s15, 4  ;;  %p536_p8 = scmp.ne.s32.totalorder %s763_s3, %s535_s19  ;;  %s37_s16 = int_to_ptr.vmem [resolvable:$true] %s36_s16 }
  0x15   :  { %p539_p9 = scmp.lt.u32.totalorder %s535_s19, %s763_s3 }
  0x17   :  { %p541_p10 = pnand %p539_p9, %p536_p8 }
  0x19   :  { %544 = shalt.err (!%p541_p10)
}
  0x1a   :  { %s545_s24 = scalar_lea.vmem %s37_s16, 256  ;;  %p550_p12 = scmp.lt.s32.totalorder %s37_s16, %s37_s16 }
  0x1b   :  { %p546_p11 = scmp.ne.s32.totalorder %s37_s16, %s545_s24  ;;  %p551_p13 = scmp.lt.s32.totalorder %s545_s24, %s545_s24 }
  0x1d   :  { %p552_p0 = por %p551_p13, %p550_p12 }
  0x1f   :  { %p553_p1 = pnand %p552_p0, %p546_p11 }
  0x21   :  { %556 = shalt.err (!%p553_p1)
}
  0x22   :  { %42 = dma.hbm_to_vmem [thread:$0]  %s763_s3, 256, %s37_s16, [#allocation6], %s586_s11, %s586_s11, %s587_s12  }
  0x23   :  { %579 = dma.done.wait [#allocation3], 256  }
  0x24   :  { %580 = vsyncadd [#allocation3], 4294967040 }
  0x25   :  { %581 = dma.done.wait [#allocation6], 256  }
  0x26   :  { %582 = vsyncadd [#allocation6], 4294967040  ;;  %v589_v0 = vmov 0   ;;  %vm59_vm0 = vcmask 1041408   ;;  %vm82_vm1 = vcmask 1046528   ;;  %vm99_vm2 = vcmask 1045504  }
  0x27   :  { %511 = vset.pattern.permute.xlu0 %v589_v0  ;;  %512 = vset.pattern.permute.xlu1 %v589_v0  ;;  %v55_v1 = vld [vmem:[%s761_s1] sm:$0xff]  ;;  %v56_v2 = vld [vmem:[%s761_s1 + $0x8] sm:$0x3]  ;;  %vm116_vm3 = vcmask 1044480   ;;  %vm238_vm4 = vcmask 80896   ;;  %v224_v23 = vld [vmem:[#allocation5] sm:$0xff] }
  0x28   :  { %v454_v3 = vld [vmem:[%s760_s0] ss:$0 sm:$0xff]  ;;  %v60_v4 = vrot.slane %v55_v1, 6  ;;  %v61_v5 = vrot.slane %v56_v2, 6  ;;  %v455_v6 = vld [vmem:[%s760_s0 + $0x1] ss:$0 sm:$0xff]  ;;  %482 = vmatprep.mubr.msk.f32.mxu0 %vm238_vm4, %v224_v23 }
  0x29   :  { %v456_v7 = vld [vmem:[%s760_s0 + $0x2] ss:$0 sm:$0xff]  ;;  %v71_v8 = vmul.f32 %v454_v3, %v55_v1  ;;  %v78_v9 = vmul.f32 %v455_v6, %v55_v1  ;;  %v457_v11 = vld [vmem:[%s760_s0 + $0x3] ss:$0 sm:$0xff]  ;;  %v458_v12 = vld [vmem:[%s760_s0 + $0x4] ss:$0 sm:$0xff]  ;;  %v72_v14 = vmul.f32 %v454_v3, %v56_v2 }
  0x2a   :  { %v95_v10 = vmul.f32 %v456_v7, %v55_v1  ;;  %v678_v13 = vsel %vm59_vm0, %v56_v2, %v60_v4  ;;  %v112_v15 = vmul.f32 %v457_v11, %v55_v1  ;;  %v129_v16 = vmul.f32 %v458_v12, %v55_v1  ;;  %v459_v17 = vld [vmem:[%s760_s0 + $0x5] ss:$0 sm:$0xff]  ;;  %v460_v22 = vld [vmem:[%s760_s0 + $0x6] ss:$0 sm:$0xff]  ;;  %v461_v37 = vld [vmem:[%s760_s0 + $0x7] ss:$0 sm:$0xff] }
  0x2b   :  { %v79_v18 = vmul.f32 %v455_v6, %v678_v13  ;;  %v83_v19 = vrot.slane %v78_v9, 1  ;;  %v96_v20 = vmul.f32 %v456_v7, %v678_v13  ;;  %v62_v24 = vsel %vm59_vm0, %v60_v4, %v61_v5  ;;  %v226_v32 = vld [vmem:[%s766_s6] sm:$0xff]  ;;  %v227_v42 = vld [vmem:[%s766_s6 + $0x8] sm:$0x3] }
  0x2c   :  { %v100_v21 = vrot.slane %v95_v10, 2  ;;  %v113_v25 = vmul.f32 %v457_v11, %v678_v13  ;;  %v117_v26 = vrot.slane %v112_v15, 3  ;;  %v130_v27 = vmul.f32 %v458_v12, %v678_v13  ;;  %230 = vperm.xlu0 %511, %v226_v32   ;;  %v463_v52 = vld [vmem:[%s760_s0 + $0x9] ss:$0 sm:$0xff]  ;;  %v462_v63 = vld [vmem:[%s760_s0 + $0x8] ss:$0 sm:$0xff] }
  0x2d   :  { %v84_v28 = vrot.slane %v79_v18, 1  ;;  %v101_v29 = vrot.slane %v96_v20, 2  ;;  %v146_v30 = vmul.f32 %v459_v17, %v55_v1  ;;  %v147_v31 = vmul.f32 %v459_v17, %v678_v13  ;;  %v221_v20 = vld [vmem:[#allocation2 + $0x8] sm:$0x3] }
  0x2e   :  { %v118_v33 = vrot.slane %v113_v25, 3  ;;  %v134_v34 = vrot.slane %v129_v16, 4  ;;  %v135_v35 = vrot.slane %v130_v27, 4  ;;  %v163_v36 = vmul.f32 %v460_v22, %v55_v1 }
  0x2f   :  { %v85_v38 = vsel %vm82_vm1, %v83_v19, %v84_v28  ;;  %v89_v39 = vadd.f32 %v84_v28, %v72_v14  ;;  %v102_v40 = vsel %vm99_vm2, %v100_v21, %v101_v29  ;;  %v164_v41 = vmul.f32 %v460_v22, %v678_v13  ;;  %v220_v22 = vld [vmem:[#allocation2] sm:$0xff] }
  0x30   :  { %v88_v43 = vadd.f32 %v85_v38, %v71_v8  ;;  %vm133_vm5 = vcmask 1043456   ;;  %v151_v44 = vrot.slane %v146_v30, 5  ;;  %v152_v45 = vrot.slane %v147_v31, 5  ;;  %235 = vperm.xlu0 %511, %v227_v42   ;;  %v323_v28 = vld [vmem:[%s764_s4] sm:$0xff]  ;;  %v324_v38 = vld [vmem:[%s764_s4 + $0x8] sm:$0x3] }
  0x31   :  { %v106_v46 = vadd.f32 %v101_v29, %v89_v39  ;;  %v119_v47 = vsel %vm116_vm3, %v117_v26, %v118_v33  ;;  %vm150_vm6 = vcmask 1042432   ;;  %v179_v48 = vmul.f32 %v461_v37, %v55_v1  ;;  %489 = vmatprep.mubr.msk.f32.mxu1 %vm238_vm4, %v323_v28  ;;  %v328_v29 = vld [vmem:[%s765_s5 + $0x8] sm:$0x3]  ;;  %v327_v30 = vld [vmem:[%s765_s5] sm:$0xff]  ;;  %s591_s4 = smov [#allocation7]  }
  0x32   :  { %v105_v49 = vadd.f32 %v102_v40, %v88_v43  ;;  %v180_v50 = vmul.f32 %v461_v37, %v678_v13  ;;  %v181_v51 = vmul.f32 %v461_v37, %v62_v24  ;;  %vm185_vm7 = vcmask 1040384   ;;  %336 = vperm.xlu1 %512, %v328_v29   ;;  %s444_s5 = sshll.u32 %s591_s4, 4  ;;  %s445_s5 = int_to_ptr.vmem [resolvable:$true] %s444_s5 }
  0x33   :  { %v123_v53 = vadd.f32 %v118_v33, %v106_v46  ;;  %v136_v54 = vsel %vm133_vm5, %v134_v34, %v135_v35  ;;  %v167_v55 = vrot.slane %v163_v36, 6  ;;  %v168_v56 = vrot.slane %v164_v41, 6  ;;  %s557_s10 = scalar_lea.vmem %s445_s5, 16  ;;  %s561_s11 = scalar_lea.vmem %s445_s5, 32 }
  0x34   :  { %v122_v57 = vadd.f32 %v119_v47, %v105_v49  ;;  %v153_v58 = vsel %vm150_vm6, %v151_v44, %v152_v45  ;;  %v187_v59 = vrot.slane %v180_v50, 7  ;;  %v189_v60 = vrot.slane %v181_v51, 7  ;;  %p558_p2 = scmp.ne.s32.totalorder %s445_s5, %s557_s10  ;;  %p562_p3 = scmp.lt.s32.totalorder %s445_s5, %s445_s5 }
  0x35   :  { %v140_v61 = vadd.f32 %v135_v35, %v123_v53  ;;  %v186_v62 = vrot.slane %v179_v48, 7  ;;  %v209_v0 = vmul.f32 %v463_v52, %v678_v13  ;;  %v210_v1 = vmul.f32 %v463_v52, %v62_v24  ;;  %p563_p4 = scmp.lt.s32.totalorder %s561_s11, %s557_s10 }
  0x36   :  { %v139_v2 = vadd.f32 %v136_v54, %v122_v57  ;;  %v169_v4 = vsel %vm59_vm0, %v167_v55, %v168_v56  ;;  %v190_v6 = vsel %vm185_vm7, %v187_v59, %v189_v60  ;;  %v201_v7 = vmul.f32 %v462_v63, %v62_v24  ;;  %331 = vperm.xlu1 %512, %v327_v30  }
  0x37   :  { %v157_v3 = vadd.f32 %v152_v45, %v140_v61  ;;  %v188_v9 = vsel %vm185_vm7, %v186_v62, %v187_v59  ;;  %v213_v10 = vrot.slane %v209_v0, 1  ;;  %v214_v11 = vrot.slane %v210_v1, 1  ;;  %p564_p5 = por %p563_p4, %p562_p3 }
  0x38   :  { %v156_v5 = vadd.f32 %v153_v58, %v139_v2  ;;  %v200_v14 = vmul.f32 %v462_v63, %v678_v13  ;;  %vm590_vm8 = vmmov 1   ;;  %v225_v13 = vld [vmem:[#allocation5 + $0x8] sm:$0x3] }
  0x39   :  { %v173_v8 = vadd.f32 %v168_v56, %v157_v3  ;;  %v215_v18 = vsel %vm82_vm1, %v213_v10, %v214_v11  ;;  %vm720_vm9 = vmpackc.low %vm59_vm0, %vm590_vm8  ;;  %p565_p6 = pnand %p564_p5, %p558_p2 }
  0x3a   :  { %v172_v12 = vadd.f32 %v169_v4, %v156_v5 }
  0x3b   :  { %v194_v15 = vadd.f32 %v190_v6, %v173_v8 }
  0x3c   :  { %v193_v16 = vadd.f32 %v188_v9, %v172_v12 }
  0x3d   :  { %v203_v17 = vadd.f32 %v201_v7, %v194_v15 }
  0x3e   :  { %v202_v19 = vadd.f32 %v200_v14, %v193_v16 }
  0x3f   :  { %v219_v21 = vadd.f32 %v214_v11, %v203_v17 }
  0x40   :  { %v218_v23 = vadd.f32 %v215_v18, %v202_v19 }
  0x41   :  { %v223_v25 = vmul.f32 %v221_v20, %v219_v21 }
  0x42   :  { %v222_v24 = vmul.f32 %v220_v22, %v218_v23 }
  0x44   :  { %v492_v27 = vpack.c.bf16 %v223_v25, %v222_v24 }
  0x46   :  { %494 = vmatprep.subr.msk.bf16.mxu0 %vm720_vm9, %v492_v27 }
  0x47   :  { %497 = vmatpush3.bf16.msk.msra.mxu0 %vm720_vm9, %v492_v27 }
  0x4a   :  { %483 = vmatmul.mubr.msk.f32.vlgmr.msra.gmra.mrb[0].mxu0 %vm238_vm4, %v225_v13 }
  0xab   :  { %v231_v31 = vpop.permute.xlu0 %230 }
  0xaf   :  { %v236_v32 = vpop.permute.xlu0 %235 }
  0xb1   :  { %v337_v39 = vpop.permute.xlu1 %336 }
  0xb5   :  { %v332_v43 = vpop.permute.xlu1 %331 }
 0x11d   :  { %v484_v33 = vpop.f32.mrb[0].mxu0 }
 0x11e   :  { %v320_v34 = vadd.f32 %v484_v33, %v236_v32  ;;  %v314_v35 = vpop.f32.mrb[1].mxu0 }
 0x11f   :  { %v315_v36 = vadd.f32 %v314_v35, %v231_v31 }
 0x120   :  { %v326_v40 = vsub.f32 %v320_v34, %v223_v25 }
 0x121   :  { %v498_v37 = vpack.c.bf16 %v320_v34, %v315_v36  ;;  %v325_v41 = vsub.f32 %v315_v36, %v222_v24 }
 0x122   :  { %v426_v47 = vmul.f32 %v326_v40, %v326_v40 }
 0x123   :  { %500 = vmatprep.subr.msk.bf16.mxu1 %vm720_vm9, %v498_v37  ;;  %v425_v49 = vmul.f32 %v325_v41, %v325_v41 }
 0x124   :  { %503 = vmatpush3.bf16.msk.msra.mxu1 %vm720_vm9, %v498_v37 }
 0x127   :  { %490 = vmatmul.mubr.msk.f32.vlgmr.msra.gmra.mrb[0].mxu1 %vm238_vm4, %v324_v38 }
 0x1fa   :  { %v491_v42 = vpop.f32.mrb[0].mxu1 }
 0x1fb   :  { %v420_v44 = vadd.f32 %v491_v42, %v337_v39  ;;  %v414_v45 = vpop.f32.mrb[1].mxu1 }
 0x1fc   :  { %v415_v46 = vadd.f32 %v414_v45, %v332_v43 }
 0x1fd   :  { %v424_v48 = vmul.f32 %v420_v44, %v320_v34 }
 0x1fe   :  { %v423_v50 = vmul.f32 %v415_v46, %v315_v36 }
 0x1ff   :  { %v428_v51 = vsub.f32 %v424_v48, %v426_v47 }
 0x200   :  { %v427_v52 = vsub.f32 %v423_v50, %v425_v49 }
 0x201   :  { %v429_v53 = vsel %vm59_vm0, %v428_v51, 0.0 }
 0x202   :  { %v430_v54 = vadd.f32 %v429_v53, %v427_v52 }
 0x204   :  { %v431_v55 = vrot.slane %v430_v54, 4 }
 0x206   :  { %v432_v56 = vadd.f32 %v431_v55, %v430_v54 }
 0x208   :  { %v433_v57 = vrot.slane %v432_v56, 2 }
 0x20a   :  { %v434_v58 = vadd.f32 %v433_v57, %v432_v56 }
 0x20c   :  { %v435_v59 = vrot.slane %v434_v58, 1 }
 0x20e   :  { %v436_v60 = vadd.f32 %v435_v59, %v434_v58 }
 0x210   :  { %437 = vst [vmem:[#allocation7] sm:$0x1] %v436_v60 }
 0x211   :  { %568 = shalt.err (!%p565_p6)
}
 0x212   :  { %s569_s13 = scalar_lea.hbm %s767_s7, 16 }
 0x213   :  { %p570_p7 = scmp.ne.s32.totalorder %s767_s7, %s569_s13  ;;  %p573_p8 = scmp.lt.u32.totalorder %s569_s13, %s767_s7 }
 0x215   :  { %p575_p9 = pnand %p573_p8, %p570_p7 }
 0x217   :  { %578 = shalt.err (!%p575_p9)
}
 0x218   :  { %447 = dma.vmem_to_hbm [thread:$0]  %s445_s5, 16, %s767_s7, [#allocation4]  }
 0x219   :  { %583 = dma.done.wait [#allocation4], 16  }
 0x21a   :  { %584 = vsyncadd [#allocation4], 4294967280 }
 0x21b   :  { %451 = vsyncpa [#allocation3], 1 }
 0x21c   :  { %452 = vsyncpa [#allocation6], 1 }
 0x21d   :  { %453 = vsyncpa [#allocation4], 1 }

</bundles_post_ra>
